<compile_context>
chip_gen: v5e
topology: v5e:2x2
jax: 0.10.0
libtpu: 0.0.40
codegen_flags: <defaults>
</compile_context>

<pallas_src>
import jax
import jax.numpy as jnp
from jax import lax
from jax.experimental import pallas as pl
from jax.experimental.pallas import tpu as pltpu


_VMEM_LIMIT = 32 * 1024 * 1024  # <= physical on v5e/v6e/v7x; raises v5e's 16MiB default
_SMEM_SPEC = pl.BlockSpec(memory_space=pltpu.MemorySpace.SMEM)


def _pick_tile(dim, prefs):
    """Largest preferred tile that divides `dim`, else the full dim (always legal)."""
    for p in prefs:
        if dim % p == 0:
            return p
    return dim


def _row_tile(dim):
    return _pick_tile(dim, (256, 128))


def _red_tile(dim):
    return _pick_tile(dim, (512, 256, 128))


# ----------------------------------------------------------------------------
# Kernels
# ----------------------------------------------------------------------------
def _linear_kernel(x_ref, w_ref, o_ref, acc_ref):
    """h_w = x @ w (bf16 in, f32 accumulate), tiled over (rows, reduction)."""
    k = pl.program_id(1)

    @pl.when(k == 0)
    def _():
        acc_ref[...] = jnp.zeros_like(acc_ref)

    acc_ref[...] += jnp.dot(x_ref[...], w_ref[...],
                            preferred_element_type=jnp.float32)

    @pl.when(k == pl.num_programs(1) - 1)
    def _():
        o_ref[...] = acc_ref[...].astype(o_ref.dtype)


def _agg_fused_kernel(adj_ref, adjo_ref, hw_ref, b_ref, alpha_ref,
                      h1_ref, hn_ref, acc1_ref, accn_ref):
    """Fused GCN-1 aggregation + AvgNeighbor:
         h_1        = PReLU(adj     @ h_w + b)
         h_neighbor = PReLU(adj_ori @ h_w)
       Both matmuls share each streamed h_w tile."""
    k = pl.program_id(1)

    @pl.when(k == 0)
    def _():
        acc1_ref[...] = jnp.zeros_like(acc1_ref)
        accn_ref[...] = jnp.zeros_like(accn_ref)

    hw = hw_ref[...]
    acc1_ref[...] += jnp.dot(adj_ref[...], hw, preferred_element_type=jnp.float32)
    accn_ref[...] += jnp.dot(adjo_ref[...], hw, preferred_element_type=jnp.float32)

    @pl.when(k == pl.num_programs(1) - 1)
    def _():
        a1 = alpha_ref[0]
        an = alpha_ref[1]
        x1 = acc1_ref[...] + b_ref[...]
        h1_ref[...] = jnp.where(x1 >= 0.0, x1, a1 * x1).astype(h1_ref.dtype)
        xn = accn_ref[...]
        hn_ref[...] = jnp.where(xn >= 0.0, xn, an * xn).astype(hn_ref.dtype)


def _agg_kernel(adj_ref, hw_ref, b_ref, alpha_ref, out_ref, acc_ref):
    """GCN-2 aggregation (no h_w / neighbor output): PReLU(adj @ h_w + b)."""
    k = pl.program_id(1)

    @pl.when(k == 0)
    def _():
        acc_ref[...] = jnp.zeros_like(acc_ref)

    acc_ref[...] += jnp.dot(adj_ref[...], hw_ref[...],
                            preferred_element_type=jnp.float32)

    @pl.when(k == pl.num_programs(1) - 1)
    def _():
        x = acc_ref[...] + b_ref[...]
        a = alpha_ref[0]
        out_ref[...] = jnp.where(x >= 0.0, x, a * x).astype(out_ref.dtype)


def _disc_kernel(idx_ref, hc_ref, hplt_ref, w_ref, b_ref, pos_ref, neg_ref):
    """Bilinear discriminator over one row tile (fully vectorised).

    idx_ref : (tm, K) int32 negative row indices for this tile (VMEM)
    hc_ref  : (tm, Dc) bf16 context tile          (h_2 or h_neighbor)
    hplt_ref: (Dpl, N) bf16 partner matrix, transposed, resident in VMEM
    w_ref   : (Dc, Dpl) bf16 bilinear weight, so t = h_c @ W
    b_ref   : (1,) f32 bias in SMEM

    Computes the all-pair score tile S = (h_c @ W) @ h_pl^T on the MXU and
    extracts positives (diagonal) and negatives (shuffled rows) with one-hot
    lane masks -- no scalar gather loop, no gather scratch buffer.
    """
    tm = hc_ref.shape[0]
    n = hplt_ref.shape[1]
    kneg = neg_ref.shape[0]
    base = pl.multiple_of(pl.program_id(0) * tm, tm)
    b = b_ref[0]

    # bilinear transform of the context rows, then all-pair scores (MXU)
    t = jnp.dot(hc_ref[...], w_ref[...], preferred_element_type=jnp.float32)
    s = jnp.dot(t.astype(hplt_ref.dtype), hplt_ref[...],
                preferred_element_type=jnp.float32)          # (tm, n) f32

    lane = lax.broadcasted_iota(jnp.int32, (tm, n), 1)
    row = lax.broadcasted_iota(jnp.int32, (tm, n), 0)

    # positives: node i paired with itself  ->  S[i, base + i]
    pos = jnp.sum(jnp.where(lane == row + base, s, 0.0), axis=-1, keepdims=True)
    pos_ref[...] = jax.nn.sigmoid(pos + b)

    # negatives: one-hot selection of S[i, idx[i, k]] per shuffle k
    idxs = idx_ref[...]                                       # (tm, kneg) int32
    for k in range(kneg):                                     # small static unroll
        sel = lane == idxs[:, k:k + 1]
        neg = jnp.sum(jnp.where(sel, s, 0.0), axis=-1, keepdims=True)
        neg_ref[k, :, :] = jax.nn.sigmoid(neg + b)


def _adj_rebuilt_kernel(hi_ref, hjt_ref, out_ref):
    """adj_rebuilt tile = sigmoid(h2[i-tile] @ h2^T[:, j-tile])."""
    g = jnp.dot(hi_ref[...], hjt_ref[...], preferred_element_type=jnp.float32)
    out_ref[...] = jax.nn.sigmoid(g)


# ----------------------------------------------------------------------------
# pallas_call wrappers
# ----------------------------------------------------------------------------
def linear_matmul(x, w, out_dtype=jnp.bfloat16):
    m, kdim = x.shape
    n = w.shape[1]
    tm = _row_tile(m)
    tk = _red_tile(kdim)
    grid = (m // tm, kdim // tk)
    return pl.pallas_call(
        _linear_kernel,
        out_shape=jax.ShapeDtypeStruct((m, n), out_dtype),
        grid_spec=pltpu.PrefetchScalarGridSpec(
            num_scalar_prefetch=0,
            grid=grid,
            in_specs=[pl.BlockSpec((tm, tk), lambda i, k: (i, k)),
                      pl.BlockSpec((tk, n), lambda i, k: (k, 0))],
            out_specs=pl.BlockSpec((tm, n), lambda i, k: (i, 0)),
            scratch_shapes=[pltpu.VMEM((tm, n), jnp.float32)]),
        compiler_params=pltpu.CompilerParams(
            dimension_semantics=("parallel", "arbitrary"),
            vmem_limit_bytes=_VMEM_LIMIT),
        cost_estimate=pl.CostEstimate(
            flops=2 * m * kdim * n, transcendentals=0,
            bytes_accessed=2 * (m * kdim + kdim * n + m * n)),
    )(x, w)


def gcn1_aggregate(adj, adj_ori, h_w, bias, alphas):
    n = adj.shape[0]
    nh = h_w.shape[1]
    tm = _row_tile(n)
    tk = _red_tile(n)
    grid = (n // tm, n // tk)
    return pl.pallas_call(
        _agg_fused_kernel,
        out_shape=(jax.ShapeDtypeStruct((n, nh), jnp.bfloat16),
                   jax.ShapeDtypeStruct((n, nh), jnp.bfloat16)),
        grid_spec=pltpu.PrefetchScalarGridSpec(
            num_scalar_prefetch=0,
            grid=grid,
            in_specs=[pl.BlockSpec((tm, tk), lambda i, k: (i, k)),
                      pl.BlockSpec((tm, tk), lambda i, k: (i, k)),
                      pl.BlockSpec((tk, nh), lambda i, k: (k, 0)),
                      pl.BlockSpec((1, nh), lambda i, k: (0, 0)),
                      _SMEM_SPEC],
            out_specs=(pl.BlockSpec((tm, nh), lambda i, k: (i, 0)),
                       pl.BlockSpec((tm, nh), lambda i, k: (i, 0))),
            scratch_shapes=[pltpu.VMEM((tm, nh), jnp.float32),
                            pltpu.VMEM((tm, nh), jnp.float32)]),
        compiler_params=pltpu.CompilerParams(
            dimension_semantics=("parallel", "arbitrary"),
            vmem_limit_bytes=_VMEM_LIMIT),
        cost_estimate=pl.CostEstimate(
            flops=4 * n * n * nh, transcendentals=0,
            bytes_accessed=2 * (2 * n * n + (n // tm) * n * nh + 2 * n * nh)),
    )(adj, adj_ori, h_w, bias, alphas)


def gcn_aggregate(adj, h_w, bias, alpha):
    n = adj.shape[0]
    nh = h_w.shape[1]
    tm = _row_tile(n)
    tk = _red_tile(n)
    grid = (n // tm, n // tk)
    return pl.pallas_call(
        _agg_kernel,
        out_shape=jax.ShapeDtypeStruct((n, nh), jnp.bfloat16),
        grid_spec=pltpu.PrefetchScalarGridSpec(
            num_scalar_prefetch=0,
            grid=grid,
            in_specs=[pl.BlockSpec((tm, tk), lambda i, k: (i, k)),
                      pl.BlockSpec((tk, nh), lambda i, k: (k, 0)),
                      pl.BlockSpec((1, nh), lambda i, k: (0, 0)),
                      _SMEM_SPEC],
            out_specs=pl.BlockSpec((tm, nh), lambda i, k: (i, 0)),
            scratch_shapes=[pltpu.VMEM((tm, nh), jnp.float32)]),
        compiler_params=pltpu.CompilerParams(
            dimension_semantics=("parallel", "arbitrary"),
            vmem_limit_bytes=_VMEM_LIMIT),
        cost_estimate=pl.CostEstimate(
            flops=2 * n * n * nh, transcendentals=0,
            bytes_accessed=2 * (n * n + (n // tm) * n * nh + n * nh)),
    )(adj, h_w, bias, alpha)


def disc_forward(idx, h_c, h_pl, w, b):
    """h_c: (N, Dc) bf16, h_pl: (N, Dpl) float, w: (Dc, Dpl) bf16, b: (1,) f32,
       idx: (K, N) int32 negative indices with idx[k, i] != i."""
    n, dc = h_c.shape
    dpl = h_pl.shape[1]
    kneg = idx.shape[0]
    tm = _row_tile(n)
    grid = (n // tm,)
    idx_t = idx.T.astype(jnp.int32)            # (N, K)  per-row negative indices
    hpl_t = h_pl.T.astype(jnp.bfloat16)        # (Dpl, N) partner matrix, resident
    pos, neg = pl.pallas_call(
        _disc_kernel,
        out_shape=(jax.ShapeDtypeStruct((n, 1), jnp.float32),
                   jax.ShapeDtypeStruct((kneg, n, 1), jnp.float32)),
        grid_spec=pltpu.PrefetchScalarGridSpec(
            num_scalar_prefetch=0,
            grid=grid,
            in_specs=[pl.BlockSpec((tm, kneg), lambda i: (i, 0)),   # neg indices
                      pl.BlockSpec((tm, dc), lambda i: (i, 0)),     # h_c tile
                      pl.BlockSpec((dpl, n), lambda i: (0, 0)),     # h_pl^T (resident)
                      pl.BlockSpec((dc, dpl), lambda i: (0, 0)),    # bilinear W (resident)
                      _SMEM_SPEC],                                  # bias scalar
            out_specs=(pl.BlockSpec((tm, 1), lambda i: (i, 0)),
                       pl.BlockSpec((kneg, tm, 1), lambda i: (0, i, 0)))),
        compiler_params=pltpu.CompilerParams(
            dimension_semantics=("parallel",),
            vmem_limit_bytes=_VMEM_LIMIT),
        cost_estimate=pl.CostEstimate(
            flops=2 * n * dc * dpl + 2 * n * dpl * n,
            transcendentals=(1 + kneg) * n,
            bytes_accessed=2 * (n * dc + dc * dpl + dpl * n) + 4 * (1 + kneg) * n),
    )(idx_t, h_c, hpl_t, w, b)
    return pos, neg


def adj_rebuild(h2, h2t):
    n, d = h2.shape
    tm = _row_tile(n)
    tn = _row_tile(n)
    grid = (n // tm, n // tn)
    return pl.pallas_call(
        _adj_rebuilt_kernel,
        out_shape=jax.ShapeDtypeStruct((n, n), jnp.float32),
        grid_spec=pltpu.PrefetchScalarGridSpec(
            num_scalar_prefetch=0,
            grid=grid,
            in_specs=[pl.BlockSpec((tm, d), lambda i, j: (i, 0)),
                      pl.BlockSpec((d, tn), lambda i, j: (0, j))],
            out_specs=pl.BlockSpec((tm, tn), lambda i, j: (i, j))),
        compiler_params=pltpu.CompilerParams(
            dimension_semantics=("parallel", "parallel"),
            vmem_limit_bytes=_VMEM_LIMIT),
        cost_estimate=pl.CostEstimate(
            flops=2 * n * n * d, transcendentals=n * n,
            bytes_accessed=4 * n * n + 4 * n * d),
    )(h2, h2t)


# ----------------------------------------------------------------------------
# Glue: parameter container + full forward
# ----------------------------------------------------------------------------
def _xavier(key, shape):
    fan_in, fan_out = shape
    lim = (6.0 / (fan_in + fan_out)) ** 0.5
    return jax.random.uniform(key, shape, jnp.float32, -lim, lim)


def negative_sampling(key, n, neg_num):
    """neg_num lists of N random node indices with idx[k, i] != i."""
    # TODO(synk): the reference repo uses graph-aware process.negative_sampling;
    # this uniform (self-excluding) sampler keeps the index semantics only.
    r = jax.random.randint(key, (neg_num, n), 0, n - 1)
    base = jnp.arange(n, dtype=jnp.int32)[None, :]
    return ((base + 1 + r) % n).astype(jnp.int32)


class GMIPallas:
    def __init__(self, n_in, n_h, key):
        ks = jax.random.split(key, 4)
        # GCN 1
        self.w1 = _xavier(ks[0], (n_in, n_h))
        self.b1 = jnp.zeros((1, n_h), jnp.float32)
        self.alpha1 = jnp.full((1,), 0.25, jnp.float32)     # GCN1 PReLU
        # GCN 2
        self.w2 = _xavier(ks[1], (n_h, n_h))
        self.b2 = jnp.zeros((1, n_h), jnp.float32)
        self.alpha2 = jnp.full((1,), 0.25, jnp.float32)     # GCN2 PReLU
        # GMI-level PReLU (on averaged neighbors)
        self.alpha_nb = jnp.full((1,), 0.25, jnp.float32)
        # Discriminators (bilinear W stored as (Dc, Dpl) so t = h_c @ W)
        self.wd1 = _xavier(ks[2], (n_h, n_in))               # disc1: h_c=h_2, h_pl=seq1
        self.bd1 = jnp.zeros((1,), jnp.float32)
        self.wd2 = _xavier(ks[3], (n_h, n_h))                # disc2: h_c=h_neighbor, h_pl=h_2
        self.bd2 = jnp.zeros((1,), jnp.float32)

    def __call__(self, seq1, adj_ori, neg_num, adj, samp_bias1, samp_bias2, key):
        x = seq1[0]                              # (N, n_in) f32
        a = adj[0].astype(jnp.bfloat16)          # (N, N)  normalized adjacency
        a_ori = adj_ori[0].astype(jnp.bfloat16)  # (N, N)  original adjacency
        n = x.shape[0]

        x_bf = x.astype(jnp.bfloat16)
        w1_bf = self.w1.astype(jnp.bfloat16)
        w2_bf = self.w2.astype(jnp.bfloat16)

        # GCN1 linear, then fused {GCN1 aggregation + AvgNeighbor} pass
        h_w = linear_matmul(x_bf, w1_bf)                             # (N, n_h) bf16
        alphas1 = jnp.concatenate([self.alpha1, self.alpha_nb])      # (2,)
        h_1, h_neighbor = gcn1_aggregate(a, a_ori, h_w, self.b1, alphas1)

        # GCN2 (its h_w is only an internal intermediate; no extra writeback)
        h_w2 = linear_matmul(h_1, w2_bf)
        h_2 = gcn_aggregate(a, h_w2, self.b2, self.alpha2)           # (N, n_h) bf16

        # negative sample indices (glue)
        k1, k2 = jax.random.split(key)
        idx1 = negative_sampling(k1, n, neg_num)
        idx2 = negative_sampling(k2, n, neg_num)

        # FMI: I(h_2 ; seq1)
        pos1, neg1 = disc_forward(idx1, h_2, x,
                                  self.wd1.astype(jnp.bfloat16), self.bd1)
        # local MI: I(h_neighbor ; h_2)
        pos2, neg2 = disc_forward(idx2, h_neighbor, h_2,
                                  self.wd2.astype(jnp.bfloat16), self.bd2)

        res_mi_pos = pos1.reshape(1, n)
        res_mi_neg = neg1.reshape(neg_num, n)
        res_local_pos = pos2.reshape(1, n)
        res_local_neg = neg2.reshape(neg_num, n)

        if samp_bias1 is not None:
            res_mi_pos = res_mi_pos + samp_bias1
            res_local_pos = res_local_pos + samp_bias1
        if samp_bias2 is not None:
            res_mi_neg = res_mi_neg + samp_bias2
            res_local_neg = res_local_neg + samp_bias2

        # I(w_ij; a_ij): sigmoid(h_2 @ h_2^T), tiled (i, j) grid
        adj_rebuilt = adj_rebuild(h_2, h_2.T)

        return res_mi_pos, res_mi_neg, res_local_pos, res_local_neg, adj_rebuilt

    def embed(self, seq, adj):
        x = seq[0].astype(jnp.bfloat16)
        a = adj[0].astype(jnp.bfloat16)
        h_w = linear_matmul(x, self.w1.astype(jnp.bfloat16))
        h_1 = gcn_aggregate(a, h_w, self.b1, self.alpha1)
        h_w2 = linear_matmul(h_1, self.w2.astype(jnp.bfloat16))
        h_2 = gcn_aggregate(a, h_w2, self.b2, self.alpha2)
        return h_2.astype(jnp.float32)


# ----------------------------------------------------------------------------
if __name__ == "__main__":
    key = jax.random.PRNGKey(0)
    k_feat, k_adj, k_param, k_neg = jax.random.split(key, 4)

    # Small demo shapes, all 128-multiples so every lane tile is full
    # (real datasets should pad n_in / n_h up to multiples of 128).
    # N=768 exercises multi-tile row grids and multi-step reductions.
    N, n_in, n_h, neg_num = 768, 256, 128, 2

    # node features (1, N, n_in)
    seq1 = jax.random.normal(k_feat, (1, N, n_in), jnp.float32)

    # random symmetric adjacency with self loops
    raw = (jax.random.uniform(k_adj, (N, N)) < 0.05).astype(jnp.float32)
    raw = jnp.minimum(jnp.maximum(raw, raw.T) + jnp.eye(N, dtype=jnp.float32), 1.0)
    deg = jnp.sum(raw, axis=1, keepdims=True)
    adj_ori = (raw / deg)[None]                                   # row-normalized
    d_inv_sqrt = 1.0 / jnp.sqrt(deg)
    adj = (d_inv_sqrt * raw * d_inv_sqrt.T)[None]                 # sym-normalized (GCN)

    model = GMIPallas(n_in, n_h, k_param)
    outs = model(seq1, adj_ori, neg_num, adj, None, None, k_neg)
    outs = jax.block_until_ready(outs)

    assert outs[0].shape == (1, N)
    assert outs[1].shape == (neg_num, N)
    assert outs[2].shape == (1, N)
    assert outs[3].shape == (neg_num, N)
    assert outs[4].shape == (N, N)
    assert all(bool(jnp.all(jnp.isfinite(o))) for o in outs)
    print("KERNEL_OK")
</pallas_src>

<mosaic_0001>
module attributes {stable_mosaic.version = 11 : i64} {
  func.func @_linear_kernel(%arg0: i32, %arg1: i32, %arg2: memref<256x256xbf16, #tpu.memory_space<vmem>>, %arg3: memref<256x128xbf16, #tpu.memory_space<vmem>>, %arg4: memref<256x128xbf16, #tpu.memory_space<vmem>>, %arg5: memref<256x128xf32, #tpu.memory_space<vmem>>) attributes {dimension_semantics = [#tpu.dimension_semantics<parallel>, #tpu.dimension_semantics<arbitrary>], iteration_bounds = array<i64: 3, 1>, scalar_prefetch = 0 : i64, scratch_operands = 1 : i64, tpu.core_type = #tpu.core_type<tc>, window_params = [{transform_indices = @transform_0, window_bounds = array<i64: 256, 256>}, {transform_indices = @transform_1, window_bounds = array<i64: 256, 128>}, {transform_indices = @transform_2, window_bounds = array<i64: 256, 128>}]} {
    %c0_i32 = arith.constant 0 : i32
    %0 = arith.cmpi eq, %arg1, %c0_i32 : i32
    %1 = arith.extui %0 : i1 to i32
    %c0_i32_0 = arith.constant 0 : i32
    %2 = arith.cmpi ne, %1, %c0_i32_0 : i32
    scf.if %2 {
      %cst_10 = arith.constant 0.000000e+00 : f32
      %12 = vector.broadcast %cst_10 : f32 to vector<256x128xf32>
      %c0_11 = arith.constant 0 : index
      %c0_12 = arith.constant 0 : index
      %13 = vector.load %arg5[%c0_11, %c0_12] : memref<256x128xf32, #tpu.memory_space<vmem>>, vector<256x128xf32>
      tpu.vector_store %arg5[%c0_11, %c0_12], %12 {strides = array<i32>} : memref<256x128xf32, #tpu.memory_space<vmem>>, vector<256x128xf32>,
    } else {
    }
    %c0 = arith.constant 0 : index
    %c0_1 = arith.constant 0 : index
    %3 = vector.load %arg5[%c0, %c0_1] : memref<256x128xf32, #tpu.memory_space<vmem>>, vector<256x128xf32>
    %c0_2 = arith.constant 0 : index
    %c0_3 = arith.constant 0 : index
    %4 = vector.load %arg2[%c0_2, %c0_3] : memref<256x256xbf16, #tpu.memory_space<vmem>>, vector<256x256xbf16>
    %c0_4 = arith.constant 0 : index
    %c0_5 = arith.constant 0 : index
    %5 = vector.load %arg3[%c0_4, %c0_5] : memref<256x128xbf16, #tpu.memory_space<vmem>>, vector<256x128xbf16>
    %cst = arith.constant dense<0.000000e+00> : vector<256x128xf32>
    %6 = tpu.matmul %4, %5, %cst {dimension_numbers = #tpu.dot_dimension_numbers<[1], [0], [0], [1], [0, 0, 1, 1], [], []>} : vector<256x256xbf16>, vector<256x128xbf16>, vector<256x128xf32> -> vector<256x128xf32>
    %7 = arith.addf %3, %6 : vector<256x128xf32>
    %c0_6 = arith.constant 0 : index
    %c0_7 = arith.constant 0 : index
    %8 = vector.load %arg5[%c0_6, %c0_7] : memref<256x128xf32, #tpu.memory_space<vmem>>, vector<256x128xf32>
    tpu.vector_store %arg5[%c0_6, %c0_7], %7 {strides = array<i32>} : memref<256x128xf32, #tpu.memory_space<vmem>>, vector<256x128xf32>,
    %c0_i32_8 = arith.constant 0 : i32
    %9 = arith.cmpi eq, %arg1, %c0_i32_8 : i32
    %10 = arith.extui %9 : i1 to i32
    %c0_i32_9 = arith.constant 0 : i32
    %11 = arith.cmpi ne, %10, %c0_i32_9 : i32
    scf.if %11 {
      %c0_10 = arith.constant 0 : index
      %c0_11 = arith.constant 0 : index
      %12 = vector.load %arg5[%c0_10, %c0_11] : memref<256x128xf32, #tpu.memory_space<vmem>>, vector<256x128xf32>
      %13 = arith.truncf %12 : vector<256x128xf32> to vector<256x128xbf16>
      %c0_12 = arith.constant 0 : index
      %c0_13 = arith.constant 0 : index
      %14 = vector.load %arg4[%c0_12, %c0_13] : memref<256x128xbf16, #tpu.memory_space<vmem>>, vector<256x128xbf16>
      tpu.vector_store %arg4[%c0_12, %c0_13], %13 {strides = array<i32>} : memref<256x128xbf16, #tpu.memory_space<vmem>>, vector<256x128xbf16>,
    } else {
    }
    return
  }
  func.func @transform_0(%arg0: i32, %arg1: i32) -> (i32, i32) {
    %c0_i32 = arith.constant 0 : i32
    return %arg0, %arg1 : i32, i32
  }
  func.func @transform_1(%arg0: i32, %arg1: i32) -> (i32, i32) {
    %c0_i32 = arith.constant 0 : i32
    %c0_i32_0 = arith.constant 0 : i32
    return %arg1, %c0_i32 : i32, i32
  }
  func.func @transform_2(%arg0: i32, %arg1: i32) -> (i32, i32) {
    %c0_i32 = arith.constant 0 : i32
    %c0_i32_0 = arith.constant 0 : i32
    return %arg0, %c0_i32 : i32, i32
  }
}

</mosaic_0001>

<bundles_post_ra>
// kernel: tpu_custom_call.1
= control target key start
LH: loop header
LB: loop body
LE: loop exit
PB: predicated region body
PF: predicated region fallthrough
CT: control target
= control target key end

     0   :  { %7 = vsyncpa [#allocation4], 0  ;;  %s1905_s0 = inlined_call_operand.hbm [shape: bf16[768,256], index: 0, kind: input, shape index: {}]   ;;  %s1906_s1 = inlined_call_operand.hbm [shape: bf16[256,128], index: 1, kind: input, shape index: {}]   ;;  %s1907_s2 = inlined_call_operand.hbm [shape: bf16[768,128], index: 2, kind: output, shape index: {}]  }
   0x1   :  { %9 = vsyncpa [#allocation4 + $0x1], 0 }
   0x2   :  { %10 = vsyncpa [#allocation7], 0 }
   0x3   :  { %11 = vsyncpa [#allocation5], 0 }
   0x4   :  { %13 = vsyncpa [#allocation5 + $0x1], 0  ;;  %s1672_s9 = smov 0   ;;  %s1674_s10 = smov 0  }
   0x5   :  { %s1676_s11 = smov 0   ;;  %s1678_s12 = smov 0  }
   0x6   :  { %s1680_s13 = smov 0   ;;  %s1682_s14 = smov 0  }
   0x7 LB: > { %s1051_s15 = sadd.s32 4294967295, %s1648_s14   ;;  %s1052_s16 = sadd.s32 4294967294, %s1648_s14   ;;  %s1648_s14 = sphi %s1682_s14, %s19_s14   ;;  %s1644_s13 = sphi %s1680_s13, %s1919_s13   ;;  %s1640_s12 = sphi %s1678_s12, %s1918_s12   ;;  %s1636_s11 = sphi %s1676_s11, %s1917_s11   ;;  %s1632_s10 = sphi %s1674_s10, %s1916_s10   ;;  %s1628_s9 = sphi %s1672_s9, %s1915_s9  }
   0x8   : > { %p53_p0 = scmp.ne.s32.totalorder %s1632_s10, %s1628_s9  ;;  %p1706_p1 = scmp.eq.s32.totalorder %s1051_s15, 0 }
   0x9   : > { %p1710_p2 = scmp.eq.s32.totalorder %s1051_s15, 2  ;;  %p109_p3 = scmp.eq.s32.totalorder %s1052_s16, 2 }
   0xa   : > { %p1716_p4 = por %p1706_p1, %p53_p0  ;;  %p1053_p5 = scmp.ge.s32.totalorder %s1648_s14, 1 }
   0xb   : > { %p1721_p6 = por %p109_p3, %p53_p0  ;;  %p116_p7 = scmp.lt.s32.totalorder %s1648_s14, 4 }
   0xc   : > { %s130_s23 = sshll.u32 %s1906_s1, 4  ;;  %s1650_s25 = smov [#allocation6]   ;;  %s131_s23 = int_to_ptr.hbm [resolvable:$true] %s130_s23 }
   0xd   : > { %p1729_p8 = pnand %p1053_p5, %p116_p7  ;;  %s132_s26 = sshll.u32 %s1650_s25, 4  ;;  %s133_s26 = int_to_ptr.vmem [resolvable:$true] %s132_s26 }
   0xe   : > { %s1651_s27 = smov 64   ;;  %s1652_s28 = smov 4  }
   0xf   : > { %p1431_p9 = pneg %p1729_p8  ;;  %s31_s29 = sadd.s32 1, %s1644_s13 }
  0x10   : > { %p33_p11 = scmp.ge.s32.totalorder %s31_s29, 3  ;;  %s40_s30 = sadd.s32 1, %s1636_s11 }
  0x11   : > { %p1432_p10 = pnand %p1431_p9, %p1706_p1  ;;  %p47_p12 = scmp.ne.s32.totalorder %s1636_s11, %s1632_s10 }
  0x12   : > { %p48_p13 = scmp.eq.s32.totalorder %s1648_s14, 0  ;;  %s1921_s29 = smov (%p33_p11, %s31_s29), 0 }
  0x13   : > { %1434 = dma.hbm_to_vmem [thread:$0]  (!%p1432_p10), %s131_s23, 2048, %s133_s26, [#allocation7], %s1651_s27, %s1651_s27, %s1652_s28  }
  0x14   : > { %p1744_p0 = por %p48_p13, %p47_p12  ;;  %p1750_p3 = por %p1710_p2, %p47_p12 }
  0x15   : > { %s35_s5 = ssub.s32 %s1644_s13, %s1921_s29  ;;  %p1444_p5 = scmp.lt.s32.totalorder %s1648_s14, 3 }
  0x16   : > { %p38_p7 = scmp.eq.s32.totalorder %s35_s5, 0  ;;  %s146_s6 = sand.u32 1, %s1636_s11  }
  0x17   : > { %s1056_s7 = sshll.u32 %s146_s6, 8  ;;  %s1262_s15 = sshll.u32 %s1644_s13, 8 }
  0x18   : > { %s1759_s8 = scalar_select %p38_p7, %s1636_s11, %s40_s30  }
  0x19   : > { %s158_s22 = scalar_lea.hbm %s1905_s0, %s1262_s15  ;;  %s150_s23 = scalar_lea.vmem [#allocation3], %s1056_s7 }
  0x1a   : > { %s161_s25 = sshll.u32 %s150_s23, 4  ;;  %s159_s18 = sshll.u32 %s158_s22, 4  ;;  %s162_s25 = int_to_ptr.vmem [resolvable:$true] %s161_s25  ;;  %s160_s18 = int_to_ptr.hbm [resolvable:$true] %s159_s18 }
  0x1b   : > { %p1436_p2 = pnand %p1444_p5, %p1744_p0  ;;  %s147_s26 = scalar_lea.sflag [#allocation4], %s146_s6 }
  0x1c   : > { %s1653_s27 = smov 128   ;;  %s1654_s28 = smov 8  }
  0x1d   : > { %1438 = dma.hbm_to_vmem [thread:$0]  (!%p1436_p2), %s160_s18, 4096, %s162_s25, %s147_s26, %s1653_s27, %s1653_s27, %s1654_s28  }
  0x1e   : > { %173 = sbr.rel (%p1729_p8) target bundleno = 331 (0x14b), region = 28  ;;  %s1770_s30 = sand.u32 (!%p1729_p8), 1, %s1632_s10  }
  0x1f   : > { %s1061_s5 = sshll.u32 (!%p1729_p8), %s1770_s30, 8  ;;  %s176_s7 = scalar_lea.sflag (!%p1729_p8), [#allocation4], %s1770_s30 }
  0x20   : > { %s1774_s15 = scalar_lea.vmem (!%p1729_p8), [#allocation3], %s1061_s5 }
  0x23   : > { %1615 = dma.done.wait (%p1716_p4), %s176_s7, 4096  }
  0x24   : > { %1617 = vsyncadd (%p1716_p4), %s176_s7, 4294963200 }
  0x25   : > { %1619 = dma.done.wait (%p1706_p1), [#allocation7], 2048  }
  0x26   : > { %1621 = vsyncadd (%p1706_p1), [#allocation7], 4294965248  ;;  %v1302_v0 = vld [vmem:[#allocation6 + $0x38] sm:$0xff]  ;;  %v1301_v2 = vld [vmem:[#allocation6 + $0x30] sm:$0xff]  ;;  %s1063_s17 = sshll.u32 %s1770_s30, 7  ;;  %s1311_s24 = sshll.u32 %s1640_s12, 7 }
  0x27   : > { %v1310_v1 = vld [vmem:[#allocation6 + $0x78] sm:$0xff]  ;;  %598 = vmatpush.bf16.msra.mxu0 %v1302_v0  ;;  %1407 = vmatpush.bf16.msra.mxu2 %v1302_v0  ;;  %v1309_v3 = vld [vmem:[#allocation6 + $0x70] sm:$0xff]  ;;  %v1300_v4 = vld [vmem:[#allocation6 + $0x28] sm:$0xff]  ;;  %s1849_s19 = scalar_lea.vmem [#allocation8], %s1063_s17  ;;  %s951_s16 = scalar_lea.hbm %s1907_s2, %s1311_s24 }
  0x28   : > { %687 = vmatpush.bf16.msra.mxu1 %v1310_v1  ;;  %1415 = vmatpush.bf16.msra.mxu3 %v1310_v1  ;;  %v1308_v5 = vld [vmem:[#allocation6 + $0x68] sm:$0xff]  ;;  %v1299_v6 = vld [vmem:[#allocation6 + $0x20] sm:$0xff]  ;;  %v1298_v8 = vld [vmem:[#allocation6 + $0x18] sm:$0xff]  ;;  %s952_s21 = sshll.u32 %s1849_s19, 4  ;;  %s954_s22 = sshll.u32 %s951_s16, 4  ;;  %s953_s21 = int_to_ptr.vmem [resolvable:$true] %s952_s21  ;;  %s955_s22 = int_to_ptr.hbm [resolvable:$true] %s954_s22 }
  0x29   : > { %v1307_v7 = vld [vmem:[#allocation6 + $0x60] sm:$0xff]  ;;  %v1306_v9 = vld [vmem:[#allocation6 + $0x58] sm:$0xff]  ;;  %v1297_v10 = vld [vmem:[#allocation6 + $0x10] sm:$0xff]  ;;  %s940_s12 = scalar_lea.sflag [#allocation5], %s1770_s30  ;;  %s1576_s23 = sshra.s32 %s955_s22, 4  ;;  %s1577_s23 = int_to_ptr.hbm [resolvable:$true] %s1576_s23 }
  0x2a   : > { %v1305_v11 = vld [vmem:[#allocation6 + $0x50] sm:$0xff]  ;;  %v1296_v12 = vld [vmem:[#allocation6 + $0x8] sm:$0xff]  ;;  %v1295_v14 = vld [vmem:[#allocation6] sm:$0xff]  ;;  %s1578_s25 = scalar_lea.hbm %s1577_s23, 128  ;;  %s1582_s27 = scalar_lea.hbm %s1907_s2, 384 }
  0x2b   : > { %599 = vmatpush.bf16.msra.mxu0 %v1301_v2  ;;  %1408 = vmatpush.bf16.msra.mxu2 %v1301_v2  ;;  %v1304_v13 = vld [vmem:[#allocation6 + $0x48] sm:$0xff]  ;;  %v1303_v15 = vld [vmem:[#allocation6 + $0x40] sm:$0xff]  ;;  %v1074_v28 = vld [vmem:[%s1774_s15 + $0x10] sm:$0xf]  ;;  %p1579_p1 = scmp.ne.s32.totalorder %s1577_s23, %s1578_s25  ;;  %p1583_p9 = scmp.lt.s32.totalorder %s1577_s23, %s1907_s2 }
  0x2c   : > { %688 = vmatpush.bf16.msra.mxu1 %v1309_v3  ;;  %1416 = vmatpush.bf16.msra.mxu3 %v1309_v3  ;;  %v1066_v16 = vld [vmem:[%s1774_s15] sm:$0xf]  ;;  %v1264_v17 = vld [vmem:[%s1774_s15 + $0x4] sm:$0xf0]  ;;  %v1263_v20 = vld [vmem:[%s1774_s15 + $0x4] sm:$0xf]  ;;  %p1584_p10 = scmp.lt.s32.totalorder %s1582_s27, %s1578_s25 }
  0x2d   : > { %v1130_v18 = vld [vmem:[%s1774_s15 + $0x80] sm:$0xf]  ;;  %v1280_v19 = vld [vmem:[%s1774_s15 + $0x84] sm:$0xf0]  ;;  %v1068_v21 = vld [vmem:[%s1774_s15 + $0x8] sm:$0xf0]  ;;  %v1067_v24 = vor.u32 %v1264_v17, %v1066_v16  ;;  %p1580_p4 = pnand %p1579_p1, %p1750_p3 }
  0x2e   : > { %v1279_v22 = vld [vmem:[%s1774_s15 + $0x84] sm:$0xf]  ;;  %v1132_v23 = vld [vmem:[%s1774_s15 + $0x88] sm:$0xf0]  ;;  %v1131_v25 = vor.u32 %v1280_v19, %v1130_v18  ;;  %v1071_v26 = vor.u32 %v1263_v20, %v1068_v21  ;;  %v1266_v29 = vld [vmem:[%s1774_s15 + $0x14] sm:$0xf0]  ;;  %p1585_p11 = por %p1584_p10, %p1583_p9 }
  0x2f   : > { %600 = vmatpush.bf16.msra.mxu0 %v1300_v4  ;;  %1409 = vmatpush.bf16.msra.mxu2 %v1300_v4  ;;  %v1135_v27 = vor.u32 %v1279_v22, %v1132_v23  ;;  %v1138_v30 = vld [vmem:[%s1774_s15 + $0x90] sm:$0xf]  ;;  %v1282_v31 = vld [vmem:[%s1774_s15 + $0x94] sm:$0xf0]  ;;  %v1265_v32 = vld [vmem:[%s1774_s15 + $0x14] sm:$0xf]  ;;  %v1075_v36 = vor.u32 %v1266_v29, %v1074_v28  ;;  %p1581_p8 = pneg %p1580_p4 }
  0x30   : > { %689 = vmatpush.bf16.msra.mxu1 %v1308_v5  ;;  %1417 = vmatpush.bf16.msra.mxu3 %v1308_v5  ;;  %v1076_v33 = vld [vmem:[%s1774_s15 + $0x18] sm:$0xf0]  ;;  %v1281_v34 = vld [vmem:[%s1774_s15 + $0x94] sm:$0xf]  ;;  %v1139_v37 = vor.u32 %v1282_v31, %v1138_v30  ;;  %v1082_v40 = vld [vmem:[%s1774_s15 + $0x20] sm:$0xf] }
  0x31   : > { %v1140_v35 = vld [vmem:[%s1774_s15 + $0x98] sm:$0xf0]  ;;  %v1079_v38 = vor.u32 %v1265_v32, %v1076_v33  ;;  %v1268_v41 = vld [vmem:[%s1774_s15 + $0x24] sm:$0xf0]  ;;  %v1146_v42 = vld [vmem:[%s1774_s15 + $0xa0] sm:$0xf]  ;;  %p1586_p12 = pnand %p1585_p11, %p1581_p8 }
  0x32   : > { %v1143_v39 = vor.u32 %v1281_v34, %v1140_v35  ;;  %v1284_v43 = vld [vmem:[%s1774_s15 + $0xa4] sm:$0xf0]  ;;  %v1267_v44 = vld [vmem:[%s1774_s15 + $0x24] sm:$0xf]  ;;  %v1084_v45 = vld [vmem:[%s1774_s15 + $0x28] sm:$0xf0]  ;;  %v1083_v48 = vor.u32 %v1268_v41, %v1082_v40 }
  0x33   : > { %601 = vmatpush.bf16.msra.mxu0 %v1299_v6  ;;  %1410 = vmatpush.bf16.msra.mxu2 %v1299_v6  ;;  %v1283_v46 = vld [vmem:[%s1774_s15 + $0xa4] sm:$0xf]  ;;  %v1148_v47 = vld [vmem:[%s1774_s15 + $0xa8] sm:$0xf0]  ;;  %v1147_v49 = vor.u32 %v1284_v43, %v1146_v42  ;;  %v1087_v50 = vor.u32 %v1267_v44, %v1084_v45  ;;  %v1090_v52 = vld [vmem:[%s1774_s15 + $0x30] sm:$0xf] }
  0x34   : > { %690 = vmatpush.bf16.msra.mxu1 %v1307_v7  ;;  %1418 = vmatpush.bf16.msra.mxu3 %v1307_v7  ;;  %v1151_v51 = vor.u32 %v1283_v46, %v1148_v47  ;;  %v1270_v53 = vld [vmem:[%s1774_s15 + $0x34] sm:$0xf0]  ;;  %v1154_v54 = vld [vmem:[%s1774_s15 + $0xb0] sm:$0xf]  ;;  %v1269_v56 = vld [vmem:[%s1774_s15 + $0x34] sm:$0xf] }
  0x35   : > { %v1286_v55 = vld [vmem:[%s1774_s15 + $0xb4] sm:$0xf0]  ;;  %v1092_v57 = vld [vmem:[%s1774_s15 + $0x38] sm:$0xf0]  ;;  %v1285_v58 = vld [vmem:[%s1774_s15 + $0xb4] sm:$0xf]  ;;  %v1091_v60 = vor.u32 %v1270_v53, %v1090_v52 }
  0x36   : > { %v1156_v59 = vld [vmem:[%s1774_s15 + $0xb8] sm:$0xf0]  ;;  %v1155_v61 = vor.u32 %v1286_v55, %v1154_v54  ;;  %v1095_v62 = vor.u32 %v1269_v56, %v1092_v57  ;;  %v1098_v0 = vld [vmem:[%s1774_s15 + $0x40] sm:$0xf]  ;;  %v1272_v1 = vld [vmem:[%s1774_s15 + $0x44] sm:$0xf0] }
  0x37   : > { %602 = vmatpush.bf16.msra.mxu0 %v1298_v8  ;;  %1411 = vmatpush.bf16.msra.mxu2 %v1298_v8  ;;  %v1159_v63 = vor.u32 %v1285_v58, %v1156_v59  ;;  %v1162_v2 = vld [vmem:[%s1774_s15 + $0xc0] sm:$0xf]  ;;  %v1288_v3 = vld [vmem:[%s1774_s15 + $0xc4] sm:$0xf0]  ;;  %v1271_v4 = vld [vmem:[%s1774_s15 + $0x44] sm:$0xf]  ;;  %v1099_v8 = vor.u32 %v1272_v1, %v1098_v0 }
  0x38   : > { %691 = vmatpush.bf16.msra.mxu1 %v1306_v9  ;;  %1419 = vmatpush.bf16.msra.mxu3 %v1306_v9  ;;  %v1100_v5 = vld [vmem:[%s1774_s15 + $0x48] sm:$0xf0]  ;;  %v1287_v6 = vld [vmem:[%s1774_s15 + $0xc4] sm:$0xf]  ;;  %v1163_v9 = vor.u32 %v1288_v3, %v1162_v2  ;;  %v1273_v16 = vld [vmem:[%s1774_s15 + $0x54] sm:$0xf] }
  0x39   : > { %v1164_v7 = vld [vmem:[%s1774_s15 + $0xc8] sm:$0xf0]  ;;  %v1108_v17 = vld [vmem:[%s1774_s15 + $0x58] sm:$0xf0]  ;;  %v1289_v18 = vld [vmem:[%s1774_s15 + $0xd4] sm:$0xf] }
  0x3a   : > { %v1172_v19 = vld [vmem:[%s1774_s15 + $0xd8] sm:$0xf0]  ;;  %v1111_v22 = vor.u32 %v1273_v16, %v1108_v17  ;;  %v1275_v28 = vld [vmem:[%s1774_s15 + $0x64] sm:$0xf]  ;;  %v1116_v29 = vld [vmem:[%s1774_s15 + $0x68] sm:$0xf0] }
  0x3b   : > { %603 = vmatpush.bf16.msra.mxu0 %v1297_v10  ;;  %1412 = vmatpush.bf16.msra.mxu2 %v1297_v10  ;;  %v1103_v10 = vor.u32 %v1271_v4, %v1100_v5  ;;  %v1175_v23 = vor.u32 %v1289_v18, %v1172_v19  ;;  %v1291_v30 = vld [vmem:[%s1774_s15 + $0xe4] sm:$0xf]  ;;  %v1180_v31 = vld [vmem:[%s1774_s15 + $0xe8] sm:$0xf0]  ;;  %v1119_v34 = vor.u32 %v1275_v28, %v1116_v29  ;;  %v1277_v40 = vld [vmem:[%s1774_s15 + $0x74] sm:$0xf] }
  0x3c   : > { %692 = vmatpush.bf16.msra.mxu1 %v1305_v11  ;;  %1420 = vmatpush.bf16.msra.mxu3 %v1305_v11  ;;  %v1167_v11 = vor.u32 %v1287_v6, %v1164_v7  ;;  %v1183_v35 = vor.u32 %v1291_v30, %v1180_v31  ;;  %v1124_v41 = vld [vmem:[%s1774_s15 + $0x78] sm:$0xf0]  ;;  %v1293_v42 = vld [vmem:[%s1774_s15 + $0xf4] sm:$0xf] }
  0x3d   : > { %v1188_v43 = vld [vmem:[%s1774_s15 + $0xf8] sm:$0xf0]  ;;  %v1127_v46 = vor.u32 %v1277_v40, %v1124_v41 }
  0x3e   : > { %v1191_v47 = vor.u32 %v1293_v42, %v1188_v43 }
  0x3f   : > { %604 = vmatpush.bf16.msra.mxu0 %v1296_v12  ;;  %1413 = vmatpush.bf16.msra.mxu2 %v1296_v12  ;;  %v1106_v12 = vld [vmem:[%s1774_s15 + $0x50] sm:$0xf] }
  0x40   : > { %693 = vmatpush.bf16.msra.mxu1 %v1304_v13  ;;  %1421 = vmatpush.bf16.msra.mxu3 %v1304_v13  ;;  %v1274_v13 = vld [vmem:[%s1774_s15 + $0x54] sm:$0xf0] }
  0x41   : > { %v1107_v20 = vor.u32 %v1274_v13, %v1106_v12 }
  0x43   : > { %605 = vmatpush.bf16.msra.mxu0 %v1295_v14  ;;  %1414 = vmatpush.bf16.msra.mxu2 %v1295_v14  ;;  %v1170_v14 = vld [vmem:[%s1774_s15 + $0xd0] sm:$0xf] }
  0x44   : > { %694 = vmatpush.bf16.msra.mxu1 %v1303_v15  ;;  %1422 = vmatpush.bf16.msra.mxu3 %v1303_v15  ;;  %v1290_v15 = vld [vmem:[%s1774_s15 + $0xd4] sm:$0xf0] }
  0x45   : > { %v1171_v21 = vor.u32 %v1290_v15, %v1170_v14 }
  0x46   : > { %606 = vmatmul.bf16.vlgmr.msra.gmra.mxu0 %v1067_v24  ;;  %646 = vmatmul.bf16.vlgmr.msra.gmra.mxu2 %v1131_v25  ;;  %v1114_v24 = vld [vmem:[%s1774_s15 + $0x60] sm:$0xf]  ;;  %v1276_v25 = vld [vmem:[%s1774_s15 + $0x64] sm:$0xf0] }
  0x47   : > { %695 = vmatmul.bf16.vlgmr.msra.gmra.mxu1 %v1071_v26  ;;  %735 = vmatmul.bf16.vlgmr.msra.gmra.mxu3 %v1135_v27  ;;  %v1178_v26 = vld [vmem:[%s1774_s15 + $0xe0] sm:$0xf]  ;;  %v1292_v27 = vld [vmem:[%s1774_s15 + $0xe4] sm:$0xf0]  ;;  %v1115_v32 = vor.u32 %v1276_v25, %v1114_v24 }
  0x48   : > { %v1179_v33 = vor.u32 %v1292_v27, %v1178_v26 }
  0x56   : > { %611 = vmatmul.bf16.gmra.mxu0 %v1075_v36  ;;  %651 = vmatmul.bf16.gmra.mxu2 %v1139_v37  ;;  %v1122_v36 = vld [vmem:[%s1774_s15 + $0x70] sm:$0xf]  ;;  %v1278_v37 = vld [vmem:[%s1774_s15 + $0x74] sm:$0xf0] }
  0x57   : > { %700 = vmatmul.bf16.gmra.mxu1 %v1079_v38  ;;  %740 = vmatmul.bf16.gmra.mxu3 %v1143_v39  ;;  %v1186_v38 = vld [vmem:[%s1774_s15 + $0xf0] sm:$0xf]  ;;  %v1294_v39 = vld [vmem:[%s1774_s15 + $0xf4] sm:$0xf0]  ;;  %v1123_v44 = vor.u32 %v1278_v37, %v1122_v36 }
  0x58   : > { %v1187_v45 = vor.u32 %v1294_v39, %v1186_v38 }
  0x66   : > { %616 = vmatmul.bf16.gmra.mxu0 %v1083_v48  ;;  %656 = vmatmul.bf16.gmra.mxu2 %v1147_v49 }
  0x67   : > { %705 = vmatmul.bf16.gmra.mxu1 %v1087_v50  ;;  %745 = vmatmul.bf16.gmra.mxu3 %v1151_v51 }
  0x76   : > { %621 = vmatmul.bf16.gmra.mxu0 %v1091_v60  ;;  %661 = vmatmul.bf16.gmra.mxu2 %v1155_v61 }
  0x77   : > { %710 = vmatmul.bf16.gmra.mxu1 %v1095_v62  ;;  %750 = vmatmul.bf16.gmra.mxu3 %v1159_v63 }
  0x86   : > { %626 = vmatmul.bf16.gmra.mxu0 %v1099_v8  ;;  %666 = vmatmul.bf16.gmra.mxu2 %v1163_v9 }
  0x87   : > { %715 = vmatmul.bf16.gmra.mxu1 %v1103_v10  ;;  %755 = vmatmul.bf16.gmra.mxu3 %v1167_v11 }
  0x96   : > { %631 = vmatmul.bf16.gmra.mxu0 %v1107_v20  ;;  %671 = vmatmul.bf16.gmra.mxu2 %v1171_v21 }
  0x97   : > { %720 = vmatmul.bf16.gmra.mxu1 %v1111_v22  ;;  %760 = vmatmul.bf16.gmra.mxu3 %v1175_v23 }
  0xa6   : > { %636 = vmatmul.bf16.gmra.mxu0 %v1115_v32  ;;  %676 = vmatmul.bf16.gmra.mxu2 %v1179_v33 }
  0xa7   : > { %725 = vmatmul.bf16.gmra.mxu1 %v1119_v34  ;;  %765 = vmatmul.bf16.gmra.mxu3 %v1183_v35 }
  0xb6   : > { %641 = vmatmul.bf16.gmra.mxu0 %v1123_v44  ;;  %681 = vmatmul.bf16.gmra.mxu2 %v1187_v45 }
  0xb7   : > { %730 = vmatmul.bf16.gmra.mxu1 %v1127_v46  ;;  %770 = vmatmul.bf16.gmra.mxu3 %v1191_v47 }
  0xc3   : > { %v607_v48 = vpop.f32.mrf.mxu0 }
  0xc4   : > { %v696_v49 = vpop.f32.mrf.mxu1 }
  0xc5   : > { %v697_v54 = vadd.f32 %v696_v49, %v607_v48 }
  0xc9   : > { %v647_v50 = vpop.f32.mrf.mxu2 }
  0xca   : > { %v736_v51 = vpop.f32.mrf.mxu3 }
  0xcb   : > { %v609_v52 = vpop.f32.mrf.mxu0  ;;  %v737_v59 = vadd.f32 %v736_v51, %v647_v50 }
  0xcc   : > { %v698_v53 = vpop.f32.mrf.mxu1 }
  0xcd   : > { %v699_v55 = vadd.f32 %v698_v53, %v609_v52 }
  0xcf   : > { %v1315_v56 = vpack.c.bf16 %v699_v55, %v697_v54 }
  0xd1   : > { %1316 = vst [vmem:[%s1849_s19] sm:$0xff] %v1315_v56   ;;  %v649_v57 = vpop.f32.mrf.mxu2 }
  0xd2   : > { %v738_v58 = vpop.f32.mrf.mxu3 }
  0xd3   : > { %v739_v60 = vadd.f32 %v738_v58, %v649_v57  ;;  %v612_v61 = vpop.f32.mrf.mxu0 }
  0xd4   : > { %v701_v62 = vpop.f32.mrf.mxu1 }
  0xd5   : > { %v1355_v63 = vpack.c.bf16 %v739_v60, %v737_v59  ;;  %v702_v4 = vadd.f32 %v701_v62, %v612_v61 }
  0xd7   : > { %1399 = vst [vmem:[%s1849_s19 + $0x40] sm:$0xff] %v1355_v63  }
  0xd9   : > { %v652_v0 = vpop.f32.mrf.mxu2 }
  0xda   : > { %v741_v1 = vpop.f32.mrf.mxu3 }
  0xdb   : > { %v614_v2 = vpop.f32.mrf.mxu0  ;;  %v742_v9 = vadd.f32 %v741_v1, %v652_v0 }
  0xdc   : > { %v703_v3 = vpop.f32.mrf.mxu1 }
  0xdd   : > { %v704_v5 = vadd.f32 %v703_v3, %v614_v2 }
  0xdf   : > { %v1320_v6 = vpack.c.bf16 %v704_v5, %v702_v4 }
  0xe1   : > { %1392 = vst [vmem:[%s1849_s19 + $0x8] sm:$0xff] %v1320_v6   ;;  %v654_v7 = vpop.f32.mrf.mxu2 }
  0xe2   : > { %v743_v8 = vpop.f32.mrf.mxu3 }
  0xe3   : > { %v744_v10 = vadd.f32 %v743_v8, %v654_v7  ;;  %v617_v11 = vpop.f32.mrf.mxu0 }
  0xe4   : > { %v706_v12 = vpop.f32.mrf.mxu1 }
  0xe5   : > { %v1360_v13 = vpack.c.bf16 %v744_v10, %v742_v9  ;;  %v707_v18 = vadd.f32 %v706_v12, %v617_v11 }
  0xe7   : > { %1400 = vst [vmem:[%s1849_s19 + $0x48] sm:$0xff] %v1360_v13  }
  0xe9   : > { %v657_v14 = vpop.f32.mrf.mxu2 }
  0xea   : > { %v746_v15 = vpop.f32.mrf.mxu3 }
  0xeb   : > { %v619_v16 = vpop.f32.mrf.mxu0  ;;  %v747_v23 = vadd.f32 %v746_v15, %v657_v14 }
  0xec   : > { %v708_v17 = vpop.f32.mrf.mxu1 }
  0xed   : > { %v709_v19 = vadd.f32 %v708_v17, %v619_v16 }
  0xef   : > { %v1325_v20 = vpack.c.bf16 %v709_v19, %v707_v18 }
  0xf1   : > { %1393 = vst [vmem:[%s1849_s19 + $0x10] sm:$0xff] %v1325_v20   ;;  %v659_v21 = vpop.f32.mrf.mxu2 }
  0xf2   : > { %v748_v22 = vpop.f32.mrf.mxu3 }
  0xf3   : > { %v749_v24 = vadd.f32 %v748_v22, %v659_v21  ;;  %v622_v25 = vpop.f32.mrf.mxu0 }
  0xf4   : > { %v711_v26 = vpop.f32.mrf.mxu1 }
  0xf5   : > { %v1365_v27 = vpack.c.bf16 %v749_v24, %v747_v23  ;;  %v712_v32 = vadd.f32 %v711_v26, %v622_v25 }
  0xf7   : > { %1401 = vst [vmem:[%s1849_s19 + $0x50] sm:$0xff] %v1365_v27  }
  0xf9   : > { %v662_v28 = vpop.f32.mrf.mxu2 }
  0xfa   : > { %v751_v29 = vpop.f32.mrf.mxu3 }
  0xfb   : > { %v624_v30 = vpop.f32.mrf.mxu0  ;;  %v752_v37 = vadd.f32 %v751_v29, %v662_v28 }
  0xfc   : > { %v713_v31 = vpop.f32.mrf.mxu1 }
  0xfd   : > { %v714_v33 = vadd.f32 %v713_v31, %v624_v30 }
  0xff   : > { %v1330_v34 = vpack.c.bf16 %v714_v33, %v712_v32 }
 0x101   : > { %1394 = vst [vmem:[%s1849_s19 + $0x18] sm:$0xff] %v1330_v34   ;;  %v664_v35 = vpop.f32.mrf.mxu2 }
 0x102   : > { %v753_v36 = vpop.f32.mrf.mxu3 }
 0x103   : > { %v754_v38 = vadd.f32 %v753_v36, %v664_v35  ;;  %v627_v39 = vpop.f32.mrf.mxu0 }
 0x104   : > { %v716_v40 = vpop.f32.mrf.mxu1 }
 0x105   : > { %v1370_v41 = vpack.c.bf16 %v754_v38, %v752_v37  ;;  %v717_v46 = vadd.f32 %v716_v40, %v627_v39 }
 0x107   : > { %1402 = vst [vmem:[%s1849_s19 + $0x58] sm:$0xff] %v1370_v41  }
 0x109   : > { %v667_v42 = vpop.f32.mrf.mxu2 }
 0x10a   : > { %v756_v43 = vpop.f32.mrf.mxu3 }
 0x10b   : > { %v629_v44 = vpop.f32.mrf.mxu0  ;;  %v757_v51 = vadd.f32 %v756_v43, %v667_v42 }
 0x10c   : > { %v718_v45 = vpop.f32.mrf.mxu1 }
 0x10d   : > { %v719_v47 = vadd.f32 %v718_v45, %v629_v44 }
 0x10f   : > { %v1335_v48 = vpack.c.bf16 %v719_v47, %v717_v46 }
 0x111   : > { %1395 = vst [vmem:[%s1849_s19 + $0x20] sm:$0xff] %v1335_v48   ;;  %v669_v49 = vpop.f32.mrf.mxu2 }
 0x112   : > { %v758_v50 = vpop.f32.mrf.mxu3 }
 0x113   : > { %v759_v52 = vadd.f32 %v758_v50, %v669_v49  ;;  %v632_v53 = vpop.f32.mrf.mxu0 }
 0x114   : > { %v721_v54 = vpop.f32.mrf.mxu1 }
 0x115   : > { %v1375_v55 = vpack.c.bf16 %v759_v52, %v757_v51  ;;  %v722_v60 = vadd.f32 %v721_v54, %v632_v53 }
 0x117   : > { %1403 = vst [vmem:[%s1849_s19 + $0x60] sm:$0xff] %v1375_v55  }
 0x119   : > { %v672_v56 = vpop.f32.mrf.mxu2 }
 0x11a   : > { %v761_v57 = vpop.f32.mrf.mxu3 }
 0x11b   : > { %v634_v58 = vpop.f32.mrf.mxu0  ;;  %v762_v1 = vadd.f32 %v761_v57, %v672_v56 }
 0x11c   : > { %v723_v59 = vpop.f32.mrf.mxu1 }
 0x11d   : > { %v724_v61 = vadd.f32 %v723_v59, %v634_v58 }
 0x11f   : > { %v1340_v62 = vpack.c.bf16 %v724_v61, %v722_v60 }
 0x121   : > { %1396 = vst [vmem:[%s1849_s19 + $0x28] sm:$0xff] %v1340_v62   ;;  %v674_v63 = vpop.f32.mrf.mxu2 }
 0x122   : > { %v763_v0 = vpop.f32.mrf.mxu3 }
 0x123   : > { %v764_v2 = vadd.f32 %v763_v0, %v674_v63  ;;  %v637_v3 = vpop.f32.mrf.mxu0 }
 0x124   : > { %v726_v4 = vpop.f32.mrf.mxu1 }
 0x125   : > { %v1380_v5 = vpack.c.bf16 %v764_v2, %v762_v1  ;;  %v727_v10 = vadd.f32 %v726_v4, %v637_v3 }
 0x127   : > { %1404 = vst [vmem:[%s1849_s19 + $0x68] sm:$0xff] %v1380_v5  }
 0x129   : > { %v677_v6 = vpop.f32.mrf.mxu2 }
 0x12a   : > { %v766_v7 = vpop.f32.mrf.mxu3 }
 0x12b   : > { %v639_v8 = vpop.f32.mrf.mxu0  ;;  %v767_v15 = vadd.f32 %v766_v7, %v677_v6 }
 0x12c   : > { %v728_v9 = vpop.f32.mrf.mxu1 }
 0x12d   : > { %v729_v11 = vadd.f32 %v728_v9, %v639_v8 }
 0x12f   : > { %v1345_v12 = vpack.c.bf16 %v729_v11, %v727_v10 }
 0x131   : > { %1397 = vst [vmem:[%s1849_s19 + $0x30] sm:$0xff] %v1345_v12   ;;  %v679_v13 = vpop.f32.mrf.mxu2 }
 0x132   : > { %v768_v14 = vpop.f32.mrf.mxu3 }
 0x133   : > { %v769_v16 = vadd.f32 %v768_v14, %v679_v13  ;;  %v642_v17 = vpop.f32.mrf.mxu0 }
 0x134   : > { %v731_v18 = vpop.f32.mrf.mxu1 }
 0x135   : > { %v1385_v19 = vpack.c.bf16 %v769_v16, %v767_v15  ;;  %v732_v24 = vadd.f32 %v731_v18, %v642_v17 }
 0x137   : > { %1405 = vst [vmem:[%s1849_s19 + $0x70] sm:$0xff] %v1385_v19  }
 0x139   : > { %v682_v20 = vpop.f32.mrf.mxu2 }
 0x13a   : > { %v771_v21 = vpop.f32.mrf.mxu3 }
 0x13b   : > { %v644_v22 = vpop.f32.mrf.mxu0  ;;  %v772_v29 = vadd.f32 %v771_v21, %v682_v20 }
 0x13c   : > { %v733_v23 = vpop.f32.mrf.mxu1 }
 0x13d   : > { %v734_v25 = vadd.f32 %v733_v23, %v644_v22 }
 0x13f   : > { %v1350_v26 = vpack.c.bf16 %v734_v25, %v732_v24 }
 0x141   : > { %1398 = vst [vmem:[%s1849_s19 + $0x38] sm:$0xff] %v1350_v26   ;;  %v684_v27 = vpop.f32.mrf.mxu2 }
 0x142   : > { %v773_v28 = vpop.f32.mrf.mxu3 }
 0x143   : > { %v774_v30 = vadd.f32 %v773_v28, %v684_v27 }
 0x145   : > { %v1390_v31 = vpack.c.bf16 %v774_v30, %v772_v29 }
 0x147   : > { %1406 = vst [vmem:[%s1849_s19 + $0x78] sm:$0xff] %v1390_v31  }
 0x148   : > { %1589 = shalt.err (!%p1586_p12)
}
 0x149   : > { %s1655_s30 = smov 64   ;;  %s1656_s7 = smov 4  }
 0x14a   : > { %1429 = dma.vmem_to_hbm [thread:$0]  (%p1750_p3), %s953_s21, 2048, %s955_s22, %s940_s12, %s1655_s30, %s1655_s30, %s1656_s7  }
 0x14b PF: > { %p1446_p13 = scmp.ge.s32.totalorder %s1648_s14, 2  ;;  %s969_s15 = sand.u32 1, %s1628_s9  }
 0x14c   : > { %s970_s17 = scalar_lea.sflag [#allocation5], %s969_s15 }
 0x14d   : > { %p1440_p0 = pnand %p1446_p13, %p1721_p6 }
 0x14f   : > { %p1441_p5 = pneg %p1440_p0 }
 0x151   : > { %1623 = dma.done.wait (%p1441_p5), %s970_s17, 2048  }
 0x152   : > { %1625 = vsyncadd (%p1441_p5), %s970_s17, 4294965248  ;;  %s19_s14 = sadd.s32 1, %s1648_s14   ;;  %s1915_s9 = smov %s1632_s10 }
 0x153   : > { %p16_p7 = scmp.ge.s32.totalorder %s19_s14, 5   ;;  %s1916_s10 = smov %s1636_s11 }
 0x154   : > { %s1917_s11 = smov %s1759_s8  ;;  %s1918_s12 = smov %s1644_s13 }
 0x155   : > { %s1919_s13 = smov %s1921_s29  ;;  %18 = sbr.rel (!%p16_p7) target bundleno = 7 (0x7), region = 86 }
 0x15a   :  { %976 = vsyncpa [#allocation4], 1 }
 0x15b   :  { %978 = vsyncpa [#allocation4 + $0x1], 1 }
 0x15c   :  { %979 = vsyncpa [#allocation7], 1 }
 0x15d   :  { %980 = vsyncpa [#allocation5], 1 }
 0x15e   :  { %982 = vsyncpa [#allocation5 + $0x1], 1 }

</bundles_post_ra>
